<compile_context>
chip_gen: v7x
topology: tpu7x:2x2x1
jax: 0.10.0
libtpu: 0.0.40
codegen_flags: <defaults>
</compile_context>

<pallas_src>
import functools
import math

import jax
import jax.numpy as jnp
from jax import lax
from jax.experimental import pallas as pl
from jax.experimental.pallas import tpu as pltpu


def _gelu(x, *, approximate):
    if approximate:
        # tanh-approx GELU: transcendental lands on the (otherwise idle) EUP slot.
        return jax.nn.gelu(x, approximate=True)
    # PyTorch nn.GELU() default: exact erf-based GELU.
    return 0.5 * x * (1.0 + lax.erf(x * (1.0 / math.sqrt(2.0))))


def mlp_header_kernel(x_ref, w1_ref, b1_ref, w2_ref, b2_ref, o_ref, h_acc,
                      *, approximate_gelu, cast_hidden_to_bf16):
    k = pl.program_id(1)

    @pl.when(k == 0)
    def _init():
        h_acc[...] = jnp.zeros_like(h_acc)

    # Native-dtype operands go straight to the MXU; accumulate in f32.
    h_acc[...] += jnp.dot(x_ref[...], w1_ref[...],
                          preferred_element_type=jnp.float32)

    @pl.when(k == pl.num_programs(1) - 1)
    def _finalize():
        h = h_acc[...] + b1_ref[...].astype(jnp.float32)
        h = _gelu(h, approximate=approximate_gelu)
        # Dropout(p=0.3): eval-mode identity.
        # TODO(synk): train-mode dropout (pltpu.prng_random_bits mask + 1/(1-p) scale).
        if cast_hidden_to_bf16:
            # Keep the second matmul on the bf16 MXU path (wrapper only enables
            # this when the inputs are bf16; skip on v5e where VPU lacks bf16).
            h = h.astype(jnp.bfloat16)
        out = jnp.dot(h, w2_ref[...], preferred_element_type=jnp.float32)
        out = out + b2_ref[...].astype(jnp.float32)
        o_ref[...] = out.astype(o_ref.dtype)


def _round_up(n, m):
    return ((n + m - 1) // m) * m


def _pick_tile_b(b_pad, align):
    # Prefer large row tiles (better HBM roofline) but keep grid > 1 so the
    # pipeline can prefetch/write back while computing and v7x's two TCs both
    # get work.
    for cand in (1024, 512, 256, 128, 64, 32, 16, 8):
        if cand % align == 0 and b_pad % cand == 0 and b_pad // cand >= 2:
            return cand
    for cand in (1024, 512, 256, 128, 64, 32, 16, 8):
        if cand % align == 0 and b_pad % cand == 0:
            return cand
    return b_pad


def _pick_tile_k(dim):
    # Split the contraction dim only when it is large enough to threaten VMEM.
    # tile_k must be a multiple of 128 (lane constraint on the x block).
    if dim <= 2048 or dim % 128 != 0:
        return dim
    for cand in (2048, 1024, 512, 256, 128):
        if dim % cand == 0:
            return cand
    return dim


def mlp_header(x, w1_t, b1, w2_t, b2, *, tile_b=None, training=False,
               approximate_gelu=False):
    """Fused MLP head.  x: (B, dim); w1_t: (dim, hid); b1: (hid,);
    w2_t: (hid, ncls); b2: (ncls,).  Weights are nn.Linear weights transposed."""
    if training:
        # TODO(synk): train-mode Dropout(0.3) is not implemented in the kernel.
        raise NotImplementedError(
            "MLPHeader Pallas kernel implements eval-mode dropout only.")

    B, dim = x.shape
    hid = w1_t.shape[1]
    ncls = w2_t.shape[1]
    assert w1_t.shape == (dim, hid) and b1.shape == (hid,)
    assert w2_t.shape == (hid, ncls) and b2.shape == (ncls,)

    dtype = x.dtype
    itemsize = jnp.dtype(dtype).itemsize
    align = 16 if dtype == jnp.bfloat16 else 8

    # --- pad batch to sublane alignment / tile size -----------------------
    if tile_b is None:
        b_pad = _round_up(B, align)
        tile_b = _pick_tile_b(b_pad, align)
    else:
        assert tile_b % align == 0, "tile_b must be sublane-aligned"
        b_pad = _round_up(B, tile_b)
    if b_pad != B:
        x = jnp.pad(x, ((0, b_pad - B), (0, 0)))

    # --- pad num_classes to a lane-dense multiple of 128 -------------------
    ncls_p = _round_up(ncls, 128)
    if ncls_p != ncls:
        w2_t = jnp.pad(w2_t, ((0, 0), (0, ncls_p - ncls)))
        b2 = jnp.pad(b2, (0, ncls_p - ncls))

    b1_2d = b1.reshape(1, hid)
    b2_2d = b2.reshape(1, ncls_p)

    tile_k = _pick_tile_k(dim)
    nb = b_pad // tile_b
    nk = dim // tile_k
    grid = (nb, nk)

    cast_hidden_to_bf16 = (dtype == jnp.bfloat16)

    def _resident(shape):
        # Constant index_map -> weights stay resident; single VMEM buffer.
        return pl.BlockSpec(shape, lambda i, k: (0, 0),
                            pipeline_mode=pl.Buffered(1))

    w1_spec = (_resident((dim, hid)) if nk == 1
               else pl.BlockSpec((tile_k, hid), lambda i, k: (k, 0)))

    # --- explicit VMEM budget (with headroom) ------------------------------
    vmem_est = (
        2 * tile_b * tile_k * itemsize                       # x, double-buffered
        + 2 * tile_b * ncls_p * itemsize                     # out, double-buffered
        + (2 if nk > 1 else 1) * tile_k * hid * itemsize     # w1
        + (hid + ncls_p + hid * ncls_p) * itemsize           # b1, b2, w2
        + tile_b * hid * 4                                   # f32 accumulator scratch
    )
    vmem_limit = min(max(int(vmem_est * 1.5) + (2 << 20), 32 << 20), 64 << 20)

    cost = pl.CostEstimate(
        flops=2 * b_pad * dim * hid + 2 * b_pad * hid * ncls_p,
        transcendentals=b_pad * hid,
        bytes_accessed=(b_pad * dim + dim * hid + hid
                        + hid * ncls_p + ncls_p + b_pad * ncls_p) * itemsize,
    )

    kernel = functools.partial(mlp_header_kernel,
                               approximate_gelu=approximate_gelu,
                               cast_hidden_to_bf16=cast_hidden_to_bf16)

    out_p = pl.pallas_call(
        kernel,
        out_shape=jax.ShapeDtypeStruct((b_pad, ncls_p), dtype),
        grid_spec=pltpu.PrefetchScalarGridSpec(
            num_scalar_prefetch=0,
            grid=grid,
            in_specs=[
                pl.BlockSpec((tile_b, tile_k), lambda i, k: (i, k)),
                w1_spec,
                _resident((1, hid)),
                _resident((hid, ncls_p)),
                _resident((1, ncls_p)),
            ],
            out_specs=pl.BlockSpec((tile_b, ncls_p), lambda i, k: (i, 0)),
            scratch_shapes=[pltpu.VMEM((tile_b, hid), jnp.float32)],
        ),
        compiler_params=pltpu.CompilerParams(
            dimension_semantics=("parallel", "arbitrary"),
            vmem_limit_bytes=vmem_limit,
        ),
        cost_estimate=cost,
    )(x, w1_t, b1_2d, w2_t, b2_2d)

    return out_p[:B, :ncls]


def init_params(key, dim, num_classes, dtype=jnp.float32):
    """Deterministic init matching nn.Linear shapes (Kaiming-uniform-ish bounds)."""
    hid = dim // 4
    k1, k2, k3, k4 = jax.random.split(key, 4)
    bound1 = 1.0 / math.sqrt(dim)
    bound2 = 1.0 / math.sqrt(hid)
    # PyTorch stores weight as (out, in); we keep the transposed (in, out) layout.
    w1_t = jax.random.uniform(k1, (dim, hid), dtype, -bound1, bound1)
    b1 = jax.random.uniform(k2, (hid,), dtype, -bound1, bound1)
    w2_t = jax.random.uniform(k3, (hid, num_classes), dtype, -bound2, bound2)
    b2 = jax.random.uniform(k4, (num_classes,), dtype, -bound2, bound2)
    return w1_t, b1, w2_t, b2


def mlp_header_ref(x, w1_t, b1, w2_t, b2):
    h = jnp.dot(x, w1_t) + b1
    h = jax.nn.gelu(h, approximate=False)
    return jnp.dot(h, w2_t) + b2


if __name__ == "__main__":
    key = jax.random.PRNGKey(0)
    kx, kp = jax.random.split(key)

    B, dim, num_classes = 64, 128, 10
    x = jax.random.normal(kx, (B, dim), jnp.float32)
    w1_t, b1, w2_t, b2 = init_params(kp, dim, num_classes)

    # float32 path (exact erf GELU, tight tolerance)
    out = jax.block_until_ready(mlp_header(x, w1_t, b1, w2_t, b2))
    ref = mlp_header_ref(x, w1_t, b1, w2_t, b2)
    assert out.shape == (B, num_classes)
    assert jnp.allclose(out, ref, atol=1e-5, rtol=1e-5), "f32 mismatch vs JAX reference"

    # bfloat16 path (native bf16 MXU operands, f32 accumulation) — looser tolerance
    xb = x.astype(jnp.bfloat16)
    pb = [p.astype(jnp.bfloat16) for p in (w1_t, b1, w2_t, b2)]
    out_bf = jax.block_until_ready(mlp_header(xb, *pb))
    ref_bf = mlp_header_ref(xb.astype(jnp.float32),
                            *[p.astype(jnp.float32) for p in pb])
    assert out_bf.shape == (B, num_classes)
    assert jnp.allclose(out_bf.astype(jnp.float32), ref_bf, atol=5e-2, rtol=5e-2), \
        "bf16 mismatch vs JAX reference"

    print("KERNEL_OK")
</pallas_src>

<mosaic_0001>
module attributes {stable_mosaic.version = 11 : i64} {
  func.func @mlp_header_kernel(%arg0: i32, %arg1: i32, %arg2: memref<32x128xf32, #tpu.memory_space<vmem>>, %arg3: memref<128x32xf32, #tpu.memory_space<vmem>>, %arg4: memref<1x32xf32, #tpu.memory_space<vmem>>, %arg5: memref<32x128xf32, #tpu.memory_space<vmem>>, %arg6: memref<1x128xf32, #tpu.memory_space<vmem>>, %arg7: memref<32x128xf32, #tpu.memory_space<vmem>>, %arg8: memref<32x32xf32, #tpu.memory_space<vmem>>) attributes {dimension_semantics = [#tpu.dimension_semantics<parallel>, #tpu.dimension_semantics<arbitrary>], iteration_bounds = array<i64: 2, 1>, scalar_prefetch = 0 : i64, scratch_operands = 1 : i64, tpu.core_type = #tpu.core_type<tc>, window_params = [{transform_indices = @transform_0, window_bounds = array<i64: 32, 128>}, {pipeline_mode = #tpu.pipeline_mode<synchronous>, transform_indices = @transform_1, window_bounds = array<i64: 128, 32>}, {pipeline_mode = #tpu.pipeline_mode<synchronous>, transform_indices = @transform_2, window_bounds = array<i64: 1, 32>}, {pipeline_mode = #tpu.pipeline_mode<synchronous>, transform_indices = @transform_3, window_bounds = array<i64: 32, 128>}, {pipeline_mode = #tpu.pipeline_mode<synchronous>, transform_indices = @transform_4, window_bounds = array<i64: 1, 128>}, {transform_indices = @transform_5, window_bounds = array<i64: 32, 128>}]} {
    %c0_i32 = arith.constant 0 : i32
    %0 = arith.cmpi eq, %arg1, %c0_i32 : i32
    %1 = arith.extui %0 : i1 to i32
    %c0_i32_0 = arith.constant 0 : i32
    %2 = arith.cmpi ne, %1, %c0_i32_0 : i32
    scf.if %2 {
      %cst_10 = arith.constant 0.000000e+00 : f32
      %12 = vector.broadcast %cst_10 : f32 to vector<32x32xf32>
      %c0_11 = arith.constant 0 : index
      %c0_12 = arith.constant 0 : index
      %13 = vector.load %arg8[%c0_11, %c0_12] : memref<32x32xf32, #tpu.memory_space<vmem>>, vector<32x32xf32>
      tpu.vector_store %arg8[%c0_11, %c0_12], %12 {strides = array<i32>} : memref<32x32xf32, #tpu.memory_space<vmem>>, vector<32x32xf32>,
    } else {
    }
    %c0 = arith.constant 0 : index
    %c0_1 = arith.constant 0 : index
    %3 = vector.load %arg8[%c0, %c0_1] : memref<32x32xf32, #tpu.memory_space<vmem>>, vector<32x32xf32>
    %c0_2 = arith.constant 0 : index
    %c0_3 = arith.constant 0 : index
    %4 = vector.load %arg2[%c0_2, %c0_3] : memref<32x128xf32, #tpu.memory_space<vmem>>, vector<32x128xf32>
    %c0_4 = arith.constant 0 : index
    %c0_5 = arith.constant 0 : index
    %5 = vector.load %arg3[%c0_4, %c0_5] : memref<128x32xf32, #tpu.memory_space<vmem>>, vector<128x32xf32>
    %cst = arith.constant dense<0.000000e+00> : vector<32x32xf32>
    %6 = tpu.matmul %4, %5, %cst {dimension_numbers = #tpu.dot_dimension_numbers<[1], [0], [0], [1], [0, 0, 1, 1], [], []>} : vector<32x128xf32>, vector<128x32xf32>, vector<32x32xf32> -> vector<32x32xf32>
    %7 = arith.addf %3, %6 : vector<32x32xf32>
    %c0_6 = arith.constant 0 : index
    %c0_7 = arith.constant 0 : index
    %8 = vector.load %arg8[%c0_6, %c0_7] : memref<32x32xf32, #tpu.memory_space<vmem>>, vector<32x32xf32>
    tpu.vector_store %arg8[%c0_6, %c0_7], %7 {strides = array<i32>} : memref<32x32xf32, #tpu.memory_space<vmem>>, vector<32x32xf32>,
    %c0_i32_8 = arith.constant 0 : i32
    %9 = arith.cmpi eq, %arg1, %c0_i32_8 : i32
    %10 = arith.extui %9 : i1 to i32
    %c0_i32_9 = arith.constant 0 : i32
    %11 = arith.cmpi ne, %10, %c0_i32_9 : i32
    scf.if %11 {
      %c0_10 = arith.constant 0 : index
      %c0_11 = arith.constant 0 : index
      %12 = vector.load %arg8[%c0_10, %c0_11] : memref<32x32xf32, #tpu.memory_space<vmem>>, vector<32x32xf32>
      %c0_12 = arith.constant 0 : index
      %c0_13 = arith.constant 0 : index
      %13 = vector.load %arg4[%c0_12, %c0_13] : memref<1x32xf32, #tpu.memory_space<vmem>>, vector<1x32xf32>
      %14 = vector.broadcast %13 : vector<1x32xf32> to vector<32x32xf32>
      %15 = arith.addf %12, %14 : vector<32x32xf32>
      %cst_14 = arith.constant 5.000000e-01 : f32
      %16 = vector.broadcast %cst_14 : f32 to vector<32x32xf32>
      %17 = arith.mulf %16, %15 : vector<32x32xf32>
      %cst_15 = arith.constant 0.707106769 : f32
      %18 = vector.broadcast %cst_15 : f32 to vector<32x32xf32>
      %19 = arith.mulf %15, %18 : vector<32x32xf32>
      %20 = math.erf %19 : vector<32x32xf32>
      %cst_16 = arith.constant 1.000000e+00 : f32
      %21 = vector.broadcast %cst_16 : f32 to vector<32x32xf32>
      %22 = arith.addf %21, %20 : vector<32x32xf32>
      %23 = arith.mulf %17, %22 : vector<32x32xf32>
      %c0_17 = arith.constant 0 : index
      %c0_18 = arith.constant 0 : index
      %24 = vector.load %arg5[%c0_17, %c0_18] : memref<32x128xf32, #tpu.memory_space<vmem>>, vector<32x128xf32>
      %cst_19 = arith.constant dense<0.000000e+00> : vector<32x128xf32>
      %25 = tpu.matmul %23, %24, %cst_19 {dimension_numbers = #tpu.dot_dimension_numbers<[1], [0], [0], [1], [0, 0, 1, 1], [], []>} : vector<32x32xf32>, vector<32x128xf32>, vector<32x128xf32> -> vector<32x128xf32>
      %c0_20 = arith.constant 0 : index
      %c0_21 = arith.constant 0 : index
      %26 = vector.load %arg6[%c0_20, %c0_21] : memref<1x128xf32, #tpu.memory_space<vmem>>, vector<1x128xf32>
      %27 = vector.broadcast %26 : vector<1x128xf32> to vector<32x128xf32>
      %28 = arith.addf %25, %27 : vector<32x128xf32>
      %c0_22 = arith.constant 0 : index
      %c0_23 = arith.constant 0 : index
      %29 = vector.load %arg7[%c0_22, %c0_23] : memref<32x128xf32, #tpu.memory_space<vmem>>, vector<32x128xf32>
      tpu.vector_store %arg7[%c0_22, %c0_23], %28 {strides = array<i32>} : memref<32x128xf32, #tpu.memory_space<vmem>>, vector<32x128xf32>,
    } else {
    }
    return
  }
  func.func @transform_0(%arg0: i32, %arg1: i32) -> (i32, i32) {
    %c0_i32 = arith.constant 0 : i32
    return %arg0, %arg1 : i32, i32
  }
  func.func @transform_1(%arg0: i32, %arg1: i32) -> (i32, i32) {
    %c0_i32 = arith.constant 0 : i32
    %c0_i32_0 = arith.constant 0 : i32
    %c0_i32_1 = arith.constant 0 : i32
    return %c0_i32, %c0_i32_0 : i32, i32
  }
  func.func @transform_2(%arg0: i32, %arg1: i32) -> (i32, i32) {
    %c0_i32 = arith.constant 0 : i32
    %c0_i32_0 = arith.constant 0 : i32
    %c0_i32_1 = arith.constant 0 : i32
    return %c0_i32, %c0_i32_0 : i32, i32
  }
  func.func @transform_3(%arg0: i32, %arg1: i32) -> (i32, i32) {
    %c0_i32 = arith.constant 0 : i32
    %c0_i32_0 = arith.constant 0 : i32
    %c0_i32_1 = arith.constant 0 : i32
    return %c0_i32, %c0_i32_0 : i32, i32
  }
  func.func @transform_4(%arg0: i32, %arg1: i32) -> (i32, i32) {
    %c0_i32 = arith.constant 0 : i32
    %c0_i32_0 = arith.constant 0 : i32
    %c0_i32_1 = arith.constant 0 : i32
    return %c0_i32, %c0_i32_0 : i32, i32
  }
  func.func @transform_5(%arg0: i32, %arg1: i32) -> (i32, i32) {
    %c0_i32 = arith.constant 0 : i32
    %c0_i32_0 = arith.constant 0 : i32
    return %arg0, %c0_i32 : i32, i32
  }
}

</mosaic_0001>

<bundles_post_ra>
// kernel: tpu_custom_call.1
= control target key start
LH: loop header
LB: loop body
LE: loop exit
PB: predicated region body
PF: predicated region fallthrough
CT: control target
= control target key end

     0   :  { %10 = vsyncpa [#allocation4], 0  ;;  %s1131_s0 = inlined_call_operand.vmem [shape: f32[64,128], index: 0, kind: input, shape index: {}]   ;;  %s1132_s1 = inlined_call_operand.vmem [shape: f32[128,32], index: 1, kind: input, shape index: {}]   ;;  %s1133_s2 = inlined_call_operand.vmem [shape: f32[1,32], index: 2, kind: input, shape index: {}]   ;;  %s1134_s3 = inlined_call_operand.vmem [shape: f32[32,128], index: 3, kind: input, shape index: {}]   ;;  %s1135_s4 = inlined_call_operand.vmem [shape: f32[1,128], index: 4, kind: input, shape index: {}]   ;;  %s1136_s5 = inlined_call_operand.hbm [shape: f32[64,128], index: 5, kind: output, shape index: {}]  }
   0x1   :  { %12 = vsyncpa [#allocation4 + $0x1], 0  ;;  %s933_s18 = smov 0   ;;  %s935_s19 = smov 0  }
   0x2   :  { %s937_s20 = smov 0   ;;  %s939_s21 = smov 0  }
   0x3   :  { %s941_s22 = smov 0   ;;  %s943_s23 = smov 0  }
   0x4 LB: > { %s613_s24 = sadd.s32 4294967295, %s897_s23   ;;  %s614_s25 = sadd.s32 4294967294, %s897_s23   ;;  %s897_s23 = sphi %s943_s23, %s18_s23   ;;  %s893_s22 = sphi %s941_s22, %s1143_s22   ;;  %s889_s21 = sphi %s939_s21, %s1142_s21   ;;  %s885_s20 = sphi %s937_s20, %s1141_s20   ;;  %s881_s19 = sphi %s935_s19, %s1140_s19   ;;  %s877_s18 = sphi %s933_s18, %s1139_s18  }
   0x5   : > { %s30_s26 = sadd.s32 1, %s893_s22  ;;  %s149_s27 = sadd.s32 1, %s885_s20 }
   0x6   : > { %p32_p0 = scmp.ge.s32.totalorder %s30_s26, 2  ;;  %p159_p1 = scmp.ne.s32.totalorder %s885_s20, %s881_s19 }
   0x7   : > { %p160_p2 = scmp.eq.s32.totalorder %s613_s24, 1  ;;  %p165_p3 = scmp.ne.s32.totalorder %s881_s19, %s877_s18 }
   0x8   : > { %s1145_s26 = smov (%p32_p0, %s30_s26), 0  ;;  %p166_p5 = scmp.eq.s32.totalorder %s614_s25, 1 }
   0x9   : > { %p973_p4 = por %p160_p2, %p159_p1  ;;  %s146_s29 = ssub.s32 %s893_s22, %s1145_s26 }
   0xa   : > { %p617_p6 = scmp.ge.s32.totalorder %s897_s23, 1  ;;  %p147_p7 = scmp.eq.s32.totalorder %s146_s29, 0 }
   0xb   : > { %p980_p8 = por %p166_p5, %p165_p3  ;;  %p208_p9 = scmp.lt.s32.totalorder %s897_s23, 3 }
   0xc   : > { %s986_s6 = scalar_select %p147_p7, %s885_s20, %s149_s27  }
   0xd   : > { %p209_p10 = pnand %p617_p6, %p208_p9 }
   0xe   : > { %v266_v0 = vld [vmem:[%s1132_s1] sm:$0xff] (!%p209_p10)  ;;  %v267_v1 = vld [vmem:[%s1132_s1 + $0x8] sm:$0xff] (!%p209_p10)  ;;  %v268_v2 = vld [vmem:[%s1132_s1 + $0x10] sm:$0xff] (!%p209_p10)  ;;  %s619_s13 = sshll.u32 (!%p209_p10), %s889_s21, 2  ;;  %vm253_vm0 = vcmask (!%p209_p10), 261120   ;;  %v899_v5 = vmov (!%p209_p10), 0.0  }
   0xf   : > { %212 = sbr.rel (%p209_p10) target bundleno = 526 (0x20e), region = 40  ;;  %v713_v3 = vpack.c.bf16 (!%p209_p10), %v267_v1, %v266_v0  ;;  %v269_v4 = vld [vmem:[%s1132_s1 + $0x18] sm:$0xff] (!%p209_p10)  ;;  %p240_p11 = scmp.lt.s32.totalorder (!%p209_p10), %s619_s13, 7  ;;  %255 = vst.msk [vmem:[#allocation2 + $0x8] sm:$0xff] (!%p209_p10), %vm253_vm0, %v899_v5  ;;  %254 = vst.msk [vmem:[#allocation2] sm:$0xff] (!%p209_p10), %vm253_vm0, %v899_v5  ;;  %v270_v7 = vld [vmem:[%s1132_s1 + $0x20] sm:$0xff] (!%p209_p10) }
  0x10   : > { %256 = vst.msk [vmem:[#allocation2 + $0x10] sm:$0xff] (!%p209_p10), %vm253_vm0, %v899_v5  ;;  %257 = vst.msk [vmem:[#allocation2 + $0x18] sm:$0xff] (!%p209_p10), %vm253_vm0, %v899_v5  ;;  %v717_v6 = vpack.c.bf16 (!%p209_p10), %v269_v4, %v268_v2  ;;  %v271_v8 = vld [vmem:[%s1132_s1 + $0x28] sm:$0xff] (!%p209_p10)  ;;  %v272_v10 = vld [vmem:[%s1132_s1 + $0x30] sm:$0xff] (!%p209_p10)  ;;  %s236_s9 = sand.u32 (!%p209_p10), 1, %s881_s19   ;;  %s632_s16 = sshll.u32 (!%p209_p10), %s889_s21, 9 }
  0x11   : > { %714 = vmatprep.subr.bf16.mxu0 (!%p209_p10), %v713_v3  ;;  %v721_v9 = vpack.c.bf16 (!%p209_p10), %v271_v8, %v270_v7  ;;  %v273_v11 = vld [vmem:[%s1132_s1 + $0x38] sm:$0xff] (!%p209_p10)  ;;  %v274_v14 = vld [vmem:[%s1132_s1 + $0x40] sm:$0xff] (!%p209_p10)  ;;  %v275_v15 = vld [vmem:[%s1132_s1 + $0x48] sm:$0xff] (!%p209_p10)  ;;  %s618_s10 = sshll.u32 (!%p209_p10), %s236_s9, 5  ;;  %s1083_s25 = scalar_lea.hbm (!%p209_p10), %s1136_s5, %s632_s16 }
  0x12   : > { %716 = vmatpush3.bf16.msra.mxu0 (!%p209_p10), %v713_v3  ;;  %v725_v13 = vpack.c.bf16 (!%p209_p10), %v273_v11, %v272_v10  ;;  %v729_v16 = vpack.c.bf16 (!%p209_p10), %v275_v15, %v274_v14  ;;  %v276_v17 = vld [vmem:[%s1132_s1 + $0x50] sm:$0xff] (!%p209_p10)  ;;  %v277_v18 = vld [vmem:[%s1132_s1 + $0x58] sm:$0xff] (!%p209_p10)  ;;  %v278_v20 = vld [vmem:[%s1132_s1 + $0x60] sm:$0xff] (!%p209_p10)  ;;  %s238_s14 = scalar_lea.vmem (!%p209_p10), [#allocation3], %s618_s10  ;;  %s900_s29 = smov (!%p209_p10), [#allocation3]  }
  0x13   : > { %718 = vmatprep.subr.bf16.mxu0 (!%p209_p10), %v717_v6  ;;  %v733_v19 = vpack.c.bf16 (!%p209_p10), %v277_v18, %v276_v17  ;;  %v279_v21 = vld [vmem:[%s1132_s1 + $0x68] sm:$0xff] (!%p209_p10)  ;;  %v280_v23 = vld [vmem:[%s1132_s1 + $0x70] sm:$0xff] (!%p209_p10)  ;;  %v281_v24 = vld [vmem:[%s1132_s1 + $0x78] sm:$0xff] (!%p209_p10)  ;;  %s540_s15 = sshll.u32 (!%p209_p10), %s238_s14, 4  ;;  %s823_s7 = sshll.u32 (!%p209_p10), %s900_s29, 4  ;;  %s1078_s15 = int_to_ptr.vmem [resolvable:$true] %s540_s15  ;;  %s824_s7 = int_to_ptr.vmem [resolvable:$false] %s823_s7 }
  0x14   : > { %v737_v22 = vpack.c.bf16 (!%p209_p10), %v279_v21, %v278_v20  ;;  %v741_v25 = vpack.c.bf16 (!%p209_p10), %v281_v24, %v280_v23  ;;  %v414_v29 = vld [vmem:[%s1134_s3] sm:$0xff] (!%p209_p10)  ;;  %v415_v30 = vld [vmem:[%s1134_s3 + $0x8] sm:$0xff] (!%p209_p10)  ;;  %v416_v31 = vld [vmem:[%s1134_s3 + $0x10] sm:$0xff] (!%p209_p10)  ;;  %s819_s21 = scalar_lea.vmem (!%p209_p10), %s1078_s15, 512  ;;  %p826_p1 = scmp.lt.s32.totalorder (!%p209_p10), %s1078_s15, %s824_s7 }
  0x15   : > { %v745_v32 = vpack.c.bf16 (!%p209_p10), %v415_v30, %v414_v29  ;;  %v417_v33 = vld [vmem:[%s1134_s3 + $0x18] sm:$0xff] (!%p209_p10)  ;;  %v621_v47 = vld [vmem:[%s1133_s2] ss:$0 sm:$0xff] (!%p209_p10)  ;;  %p820_p12 = scmp.ne.s32.totalorder (!%p209_p10), %s1078_s15, %s819_s21 }
  0x16   : > { %s1147_s13 = smov (!%p240_p11, %s619_s13), 7  ;;  %720 = vmatpush3.bf16.msra.mxu0 %v717_v6  ;;  %v749_v34 = vpack.c.bf16 %v417_v33, %v416_v31  ;;  %v259_v35 = vld [vmem:[#allocation2 + $0x8] sm:$0xff]  ;;  %v258_v36 = vld [vmem:[#allocation2] sm:$0xff] }
  0x17   : > { %s620_s27 = sshll.u32 %s1147_s13, 3  ;;  %722 = vmatprep.subr.bf16.mxu0 %v721_v9  ;;  %746 = vmatprep.subr.bf16.mxu1 %v745_v32  ;;  %v261_v41 = vld [vmem:[#allocation2 + $0x18] sm:$0xff]  ;;  %v260_v42 = vld [vmem:[#allocation2 + $0x10] sm:$0xff]  ;;  %p821_p13 = pnand %p820_p12, %p973_p4 }
  0x18   : > { %s1020_s12 = scalar_lea.vmem %s1131_s0, %s620_s27  ;;  %748 = vmatpush3.bf16.msra.mxu1 %v745_v32  ;;  %s1085_s27 = scalar_lea.sflag [#allocation4], %s236_s9 }
  0x19   : > { %v262_v12 = vld [vmem:[%s1020_s12] sm:$0xff]  ;;  %v263_v26 = vld [vmem:[%s1020_s12 + $0x8] sm:$0xff]  ;;  %v264_v27 = vld [vmem:[%s1020_s12 + $0x10] sm:$0xff]  ;;  %750 = vmatprep.subr.bf16.mxu1 %v749_v34  ;;  %p822_p0 = pneg %p821_p13 }
  0x1a   : > { %693 = vmatprep.mubr.f32.mxu0 %v262_v12  ;;  %724 = vmatpush3.bf16.msra.mxu0 %v721_v9  ;;  %v265_v28 = vld [vmem:[%s1020_s12 + $0x18] sm:$0xff]  ;;  %v622_v12 = vld [vmem:[%s1135_s4] ss:$0 sm:$0xff]  ;;  %s825_s12 = scalar_lea.vmem %s824_s7, 1024 }
  0x1b   : > { %726 = vmatprep.subr.bf16.mxu0 %v725_v13  ;;  %p827_p2 = scmp.lt.s32.totalorder %s825_s12, %s819_s21 }
  0x1c   : > { %752 = vmatpush3.bf16.msra.mxu1 %v749_v34 }
  0x1d   : > { %p828_p3 = por %p827_p2, %p826_p1 }
  0x1e   : > { %728 = vmatpush3.bf16.msra.mxu0 %v725_v13 }
  0x1f   : > { %730 = vmatprep.subr.bf16.mxu0 %v729_v16  ;;  %p829_p5 = pnand %p828_p3, %p822_p0 }
  0x22   : > { %732 = vmatpush3.bf16.msra.mxu0 %v729_v16 }
  0x23   : > { %734 = vmatprep.subr.bf16.mxu0 %v733_v19 }
  0x26   : > { %736 = vmatpush3.bf16.msra.mxu0 %v733_v19 }
  0x27   : > { %738 = vmatprep.subr.bf16.mxu0 %v737_v22 }
  0x2a   : > { %740 = vmatpush3.bf16.msra.mxu0 %v737_v22 }
  0x2b   : > { %742 = vmatprep.subr.bf16.mxu0 %v741_v25 }
  0x2e   : > { %744 = vmatpush3.bf16.msra.mxu0 %v741_v25 }
  0x31   : > { %694 = vmatmul.mubr.f32.vlgmr.msra.gmra.mrb[0].mxu0 %v263_v26 }
  0x32   : > { %696 = vmatprep.mubr.f32.mxu0 %v264_v27 }
  0x35   : > { %697 = vmatmul.mubr.f32.gmra.mrb[2].mxu0 %v265_v28 }
 0x104   : > { %v695_v37 = vpop.f32.mrb[0].mxu0 }
 0x105   : > { %v368_v38 = vadd.f32 %v695_v37, %v259_v35  ;;  %v348_v39 = vpop.f32.mrb[1].mxu0 }
 0x106   : > { %v367_v40 = vadd.f32 %v348_v39, %v258_v36 }
 0x107   : > { %373 = vst.msk [vmem:[#allocation2 + $0x8] sm:$0xff] %vm253_vm0, %v368_v38 }
 0x108   : > { %372 = vst.msk [vmem:[#allocation2] sm:$0xff] %vm253_vm0, %v367_v40  ;;  %v698_v43 = vpop.f32.mrb[2].mxu0 }
 0x109   : > { %v370_v44 = vadd.f32 %v698_v43, %v261_v41  ;;  %v358_v45 = vpop.f32.mrb[3].mxu0 }
 0x10a   : > { %v369_v46 = vadd.f32 %v358_v45, %v260_v42 }
 0x10b   : > { %375 = vst.msk [vmem:[#allocation2 + $0x18] sm:$0xff] %vm253_vm0, %v370_v44 }
 0x10c   : > { %374 = vst.msk [vmem:[#allocation2 + $0x10] sm:$0xff] %vm253_vm0, %v369_v46 }
 0x10e   : > { %v380_v48 = vld [vmem:[#allocation2 + $0x8] sm:$0xff] }
 0x10f   : > { %v379_v49 = vld [vmem:[#allocation2] sm:$0xff]  ;;  %v391_v50 = vadd.f32 %v621_v47, %v380_v48 }
 0x110   : > { %v390_v51 = vadd.f32 %v621_v47, %v379_v49 }
 0x111   : > { %v399_v52 = vmul.f32 0.70710677, %v391_v50  ;;  %v395_v1 = vmul.f32 0.5, %v391_v50 }
 0x112   : > { %v398_v53 = vmul.f32 0.70710677, %v390_v51  ;;  %v382_v54 = vld [vmem:[#allocation2 + $0x18] sm:$0xff]  ;;  %v394_v63 = vmul.f32 0.5, %v390_v51 }
 0x113   : > { %811 = verf.f32 %v399_v52  ;;  %v381_v55 = vld [vmem:[#allocation2 + $0x10] sm:$0xff]  ;;  %v393_v56 = vadd.f32 %v621_v47, %v382_v54 }
 0x114   : > { %813 = verf.f32 %v398_v53  ;;  %v392_v57 = vadd.f32 %v621_v47, %v381_v55 }
 0x115   : > { %v401_v58 = vmul.f32 0.70710677, %v393_v56  ;;  %v397_v9 = vmul.f32 0.5, %v393_v56 }
 0x116   : > { %v400_v59 = vmul.f32 0.70710677, %v392_v57  ;;  %v396_v7 = vmul.f32 0.5, %v392_v57 }
 0x117   : > { %815 = verf.f32 %v401_v58 }
 0x118   : > { %817 = verf.f32 %v400_v59 }
 0x11d   : > { %v812_v60 = vpop.eup %811 }
 0x11e   : > { %v814_v61 = vpop.eup %813  ;;  %v407_v62 = vadd.f32 1.0, %v812_v60 }
 0x11f   : > { %v406_v0 = vadd.f32 1.0, %v814_v61 }
 0x120   : > { %v411_v5 = vmul.f32 %v407_v62, %v395_v1 }
 0x121   : > { %v816_v2 = vpop.eup %815  ;;  %v410_v3 = vmul.f32 %v406_v0, %v394_v63 }
 0x122   : > { %v818_v4 = vpop.eup %817  ;;  %v409_v6 = vadd.f32 1.0, %v816_v2 }
 0x123   : > { %707 = vmatprep.mubr.msk.f32.mxu1 %vm253_vm0, %v410_v3  ;;  %v408_v8 = vadd.f32 1.0, %v818_v4 }
 0x124   : > { %708 = vmatmul.mubr.msk.f32.vlgmr.msra.gmra.mrb[0].mxu1 %vm253_vm0, %v411_v5  ;;  %v413_v11 = vmul.f32 %v409_v6, %v397_v9 }
 0x125   : > { %v412_v10 = vmul.f32 %v408_v8, %v396_v7 }
 0x127   : > { %710 = vmatprep.mubr.msk.f32.mxu1 %vm253_vm0, %v412_v10 }
 0x128   : > { %711 = vmatmul.mubr.msk.f32.gmra.mrb[2].mxu1 %vm253_vm0, %v413_v11 }
 0x1f7   : > { %v709_v13 = vpop.f32.mrb[0].mxu1 }
 0x1f8   : > { %v509_v14 = vadd.f32 %v709_v13, %v622_v12  ;;  %v503_v15 = vpop.f32.mrb[1].mxu1 }
 0x1f9   : > { %v504_v16 = vadd.f32 %v622_v12, %v503_v15 }
 0x1fa   : > { %523 = vst [vmem:[%s238_s14 + $0x8] sm:$0xff] %v509_v14 }
 0x1fb   : > { %522 = vst [vmem:[%s238_s14] sm:$0xff] %v504_v16  ;;  %v712_v17 = vpop.f32.mrb[2].mxu1 }
 0x1fc   : > { %v519_v18 = vadd.f32 %v712_v17, %v622_v12  ;;  %v513_v19 = vpop.f32.mrb[3].mxu1 }
 0x1fd   : > { %v514_v20 = vadd.f32 %v622_v12, %v513_v19 }
 0x1fe   : > { %525 = vst [vmem:[%s238_s14 + $0x18] sm:$0xff] %v519_v18 }
 0x1ff   : > { %524 = vst [vmem:[%s238_s14 + $0x10] sm:$0xff] %v514_v20 }
 0x200   : > { %832 = shalt.err (!%p829_p5)
}
 0x201   : > { %s833_s8 = scalar_lea.hbm %s1083_s25, 512  ;;  %s837_s11 = scalar_lea.hbm %s1136_s5, 1024 }
 0x202   : > { %p834_p6 = scmp.ne.s32.totalorder %s1083_s25, %s833_s8  ;;  %p838_p10 = scmp.lt.u32.totalorder %s1083_s25, %s1136_s5 }
 0x203   : > { %p839_p11 = scmp.lt.u32.totalorder %s837_s11, %s833_s8  ;;  %p841_p13 = scmp.lt.u32.totalorder %s833_s8, %s1083_s25 }
 0x204   : > { %p835_p7 = pnand %p834_p6, %p973_p4 }
 0x205   : > { %p840_p12 = por %p839_p11, %p838_p10 }
 0x206   : > { %p836_p9 = pneg %p835_p7 }
 0x207   : > { %p842_p0 = por %p841_p13, %p840_p12 }
 0x209   : > { %p843_p1 = pnand %p842_p0, %p836_p9 }
 0x20b   : > { %846 = shalt.err (!%p843_p1)
}
 0x20c   : > { %s901_s16 = smov 128   ;;  %s902_s17 = smov 8  }
 0x20d   : > { %753 = dma.vmem_to_hbm [thread:$0]  (%p973_p4), %s1078_s15, 512, %s1083_s25, %s1085_s27, %s901_s16, %s901_s16, %s902_s17  }
 0x20e PF: > { %p759_p2 = scmp.ge.s32.totalorder %s897_s23, 2  ;;  %s555_s24 = sand.u32 1, %s877_s18  }
 0x20f   : > { %s556_s21 = scalar_lea.sflag [#allocation4], %s555_s24 }
 0x210   : > { %p756_p3 = pnand %p759_p2, %p980_p8 }
 0x212   : > { %872 = dma.done.wait (!%p756_p3), %s556_s21, 512  }
 0x213   : > { %874 = vsyncadd (!%p756_p3), %s556_s21, 4294966784  ;;  %s18_s23 = sadd.s32 1, %s897_s23   ;;  %s1139_s18 = smov %s881_s19 }
 0x214   : > { %p15_p5 = scmp.ge.s32.totalorder %s18_s23, 4   ;;  %s1140_s19 = smov %s885_s20 }
 0x215   : > { %s1141_s20 = smov %s986_s6  ;;  %s1142_s21 = smov %s893_s22 }
 0x216   : > { %s1143_s22 = smov %s1145_s26  ;;  %17 = sbr.rel (!%p15_p5) target bundleno = 4 (0x4), region = 83 }
 0x21d   :  { %561 = vsyncpa [#allocation4], 1 }
 0x21e   :  { %563 = vsyncpa [#allocation4 + $0x1], 1 }

</bundles_post_ra>
